<compile_context>
chip_gen: v7x
topology: tpu7x:2x2x1
jax: 0.10.0
libtpu: 0.0.40
codegen_flags: <defaults>
</compile_context>

<pallas_src>
import math
import jax
import jax.numpy as jnp
from jax.experimental import pallas as pl
from jax.experimental.pallas import tpu as pltpu

_HIDDEN = 200
_CODE = 20
_VMEM_BUDGET = 40 * 1024 * 1024   # conservative working-set budget (fits v7x 64 MiB/TC)
_VMEM_LIMIT = 48 * 1024 * 1024    # scoped VMEM limit (> 16/32 MiB defaults, < v7x physical)


def _round_up(x, m):
    return ((x + m - 1) // m) * m


def _pad_to(a, shape):
    pads = tuple((0, t - s) for s, t in zip(a.shape, shape))
    if all(p == (0, 0) for p in pads):
        return a
    return jnp.pad(a, pads)


def _ae_kernel(x_ref,
               w1_ref, b1_ref,   # encoder layer 1: (F, 200), (1, 200)
               w2_ref, b2_ref,   # encoder layer 2: (200, C), (1, C)
               w3_ref, b3_ref,   # decoder layer 1: (C, 200), (1, 200)
               w4_ref, b4_ref,   # decoder layer 2: (200, F), (1, F)
               code_ref, rec_ref):
    """Whole autoencoder forward for one batch tile: 4 MXU matmuls + bias + ReLU."""
    wdt = w1_ref.dtype           # matmul operand dtype (f32 or bf16)
    x = x_ref[...]               # already in wdt; no redundant astype

    # Encoder
    h1 = jnp.dot(x, w1_ref[...], preferred_element_type=jnp.float32) + b1_ref[...]
    h1 = jnp.maximum(h1, 0.0)
    code = jnp.dot(h1.astype(wdt), w2_ref[...],
                   preferred_element_type=jnp.float32) + b2_ref[...]

    # Decoder
    h2 = jnp.dot(code.astype(wdt), w3_ref[...],
                 preferred_element_type=jnp.float32) + b3_ref[...]
    h2 = jnp.maximum(h2, 0.0)
    rec = jnp.dot(h2.astype(wdt), w4_ref[...],
                  preferred_element_type=jnp.float32) + b4_ref[...]
    rec = jnp.maximum(rec, 0.0)

    code_ref[...] = code.astype(code_ref.dtype)
    rec_ref[...] = rec.astype(rec_ref.dtype)


def autoencoder_20_forward(x, params, *, batch_tile=512, use_bf16_matmul=False):
    """Run the fused autoencoder kernel.

    x: (B, num_inputs) float32 (any B; ragged batches are zero-padded).
    params: dict of w1,b1,w2,b2,w3,b3,w4,b4 (weights already (in, out)).
    Returns (code, reconstruction) = ((B, 20), (B, num_inputs)) in float32.
    """
    B, num_inputs = x.shape
    w1, b1 = params["w1"], params["b1"]
    w2, b2 = params["w2"], params["b2"]
    w3, b3 = params["w3"], params["b3"]
    w4, b4 = params["w4"], params["b4"]
    assert w1.shape == (num_inputs, _HIDDEN)
    code_dim = w2.shape[1]

    # Lane-dense padding: feature and code dims padded to multiples of 128 so
    # tiled inputs/outputs use full, unmasked vector stores. Padded weight
    # rows/cols and bias entries are zero, so the math is unchanged.
    F = _round_up(num_inputs, 128)
    C = _round_up(code_dim, 128)

    wdt = jnp.bfloat16 if use_bf16_matmul else jnp.float32
    w1p = _pad_to(w1, (F, _HIDDEN)).astype(wdt)
    w2p = _pad_to(w2, (_HIDDEN, C)).astype(wdt)
    w3p = _pad_to(w3, (C, _HIDDEN)).astype(wdt)
    w4p = _pad_to(w4, (_HIDDEN, F)).astype(wdt)
    b1p = b1.astype(jnp.float32)
    b2p = _pad_to(b2, (1, C)).astype(jnp.float32)
    b3p = b3.astype(jnp.float32)
    b4p = _pad_to(b4, (1, F)).astype(jnp.float32)

    # --- choose the batch tile under a VMEM budget (Pallas double-buffers
    # every input/output block; conservative estimate below). -----------------
    x_sz = jnp.dtype(wdt).itemsize
    w_bytes = 2 * ((F * _HIDDEN * 2 + _HIDDEN * C + C * _HIDDEN) * x_sz
                   + (2 * _HIDDEN + C + F) * 4)
    per_row = 2 * (F * x_sz + F * 4 + C * 4)   # x tile in + rec/code tiles out

    b8 = _round_up(B, 8)
    bt = max(8, _round_up(min(batch_tile, b8), 8))
    bt_cap = max(8, ((_VMEM_BUDGET - w_bytes) // per_row) // 8 * 8)
    bt = min(bt, bt_cap)
    # Prefer >= 2 grid steps so the "parallel" grid axis can shard across both
    # TensorCores on v7x megacore.
    if b8 > 8 and _round_up(B, bt) // bt < 2:
        bt = max(8, _round_up((b8 + 1) // 2, 8))
    B_pad = _round_up(B, bt)
    grid = (B_pad // bt,)

    xp = _pad_to(x, (B_pad, F)).astype(wdt)

    # Weight / bias blocks cover the full arrays (block == full shape, so the
    # (8,128) divisibility rule does not apply); only the batch axis is tiled.
    # Note: for num_inputs in the thousands one could additionally K-tile
    # w1/w4 (512-wide k blocks + f32 acc scratch) to bound weight residency.
    full = lambda shape: pl.BlockSpec(shape, lambda i: (0, 0))

    code_p, rec_p = pl.pallas_call(
        _ae_kernel,
        out_shape=(
            jax.ShapeDtypeStruct((B_pad, C), jnp.float32),
            jax.ShapeDtypeStruct((B_pad, F), jnp.float32),
        ),
        grid_spec=pltpu.PrefetchScalarGridSpec(
            num_scalar_prefetch=0,
            grid=grid,
            in_specs=[
                pl.BlockSpec((bt, F), lambda i: (i, 0)),   # x tile
                full(w1p.shape), full(b1p.shape),
                full(w2p.shape), full(b2p.shape),
                full(w3p.shape), full(b3p.shape),
                full(w4p.shape), full(b4p.shape),
            ],
            out_specs=[
                pl.BlockSpec((bt, C), lambda i: (i, 0)),   # code tile (lane-dense)
                pl.BlockSpec((bt, F), lambda i: (i, 0)),   # reconstruction tile
            ],
        ),
        compiler_params=pltpu.CompilerParams(
            dimension_semantics=("parallel",),
            vmem_limit_bytes=_VMEM_LIMIT,
        ),
    )(xp, w1p, b1p, w2p, b2p, w3p, b3p, w4p, b4p)

    return code_p[:B, :code_dim], rec_p[:B, :num_inputs]


def _xavier_uniform(key, fan_in, fan_out):
    # Matches torch.nn.init.xavier_uniform_ (gain=1): U(-a, a), a = sqrt(6/(fan_in+fan_out)).
    a = math.sqrt(6.0 / (fan_in + fan_out))
    # Stored directly as (in, out) — the distribution is symmetric so this is
    # equivalent to initializing PyTorch's (out, in) weight and transposing.
    return jax.random.uniform(key, (fan_in, fan_out), jnp.float32, -a, a)


def make_params(key, num_inputs):
    k1, k2, k3, k4 = jax.random.split(key, 4)
    return {
        # Encoder
        "w1": _xavier_uniform(k1, num_inputs, _HIDDEN),
        "b1": jnp.full((1, _HIDDEN), 0.01, jnp.float32),
        "w2": _xavier_uniform(k2, _HIDDEN, _CODE),
        "b2": jnp.full((1, _CODE), 0.01, jnp.float32),
        # Decoder
        "w3": _xavier_uniform(k3, _CODE, _HIDDEN),
        "b3": jnp.full((1, _HIDDEN), 0.01, jnp.float32),
        "w4": _xavier_uniform(k4, _HIDDEN, num_inputs),
        "b4": jnp.full((1, num_inputs), 0.01, jnp.float32),
    }


def _reference_forward(x, p):
    h1 = jnp.maximum(x @ p["w1"] + p["b1"], 0.0)
    code = h1 @ p["w2"] + p["b2"]
    h2 = jnp.maximum(code @ p["w3"] + p["b3"], 0.0)
    rec = jnp.maximum(h2 @ p["w4"] + p["b4"], 0.0)
    return code, rec


if __name__ == "__main__":
    key = jax.random.PRNGKey(0)
    kx, kp = jax.random.split(key)

    num_inputs = 64  # small synthetic feature count
    params = make_params(kp, num_inputs)

    # Test 1: small aligned batch, full f32 matmul path (strict tolerance).
    x = jax.random.normal(kx, (8, num_inputs), jnp.float32)
    code, rec = autoencoder_20_forward(x, params)
    jax.block_until_ready((code, rec))
    code_ref, rec_ref = _reference_forward(x, params)
    assert code.shape == (8, _CODE) and rec.shape == (8, num_inputs)
    assert jnp.allclose(code, code_ref, atol=1e-5, rtol=1e-5)
    assert jnp.allclose(rec, rec_ref, atol=1e-5, rtol=1e-5)

    # Test 2: ragged batch (exercises padding + >=2 grid steps) with bf16 MXU
    # operands and f32 accumulation (looser tolerance).
    x2 = jax.random.normal(kx, (20, num_inputs), jnp.float32)
    code2, rec2 = autoencoder_20_forward(x2, params, use_bf16_matmul=True)
    jax.block_until_ready((code2, rec2))
    code2_ref, rec2_ref = _reference_forward(x2, params)
    assert code2.shape == (20, _CODE) and rec2.shape == (20, num_inputs)
    assert jnp.allclose(code2, code2_ref, atol=1e-1, rtol=1e-1)
    assert jnp.allclose(rec2, rec2_ref, atol=1e-1, rtol=1e-1)

    print("KERNEL_OK")
</pallas_src>

<mosaic_0001>
module attributes {stable_mosaic.version = 11 : i64} {
  func.func @_ae_kernel(%arg0: i32, %arg1: memref<8x128xf32, #tpu.memory_space<vmem>>, %arg2: memref<128x200xf32, #tpu.memory_space<vmem>>, %arg3: memref<1x200xf32, #tpu.memory_space<vmem>>, %arg4: memref<200x128xf32, #tpu.memory_space<vmem>>, %arg5: memref<1x128xf32, #tpu.memory_space<vmem>>, %arg6: memref<128x200xf32, #tpu.memory_space<vmem>>, %arg7: memref<1x200xf32, #tpu.memory_space<vmem>>, %arg8: memref<200x128xf32, #tpu.memory_space<vmem>>, %arg9: memref<1x128xf32, #tpu.memory_space<vmem>>, %arg10: memref<8x128xf32, #tpu.memory_space<vmem>>, %arg11: memref<8x128xf32, #tpu.memory_space<vmem>>) attributes {dimension_semantics = [#tpu.dimension_semantics<parallel>], iteration_bounds = array<i64: 1>, scalar_prefetch = 0 : i64, scratch_operands = 0 : i64, tpu.core_type = #tpu.core_type<tc>, window_params = [{transform_indices = @transform_0, window_bounds = array<i64: 8, 128>}, {pipeline_mode = #tpu.pipeline_mode<synchronous>, transform_indices = @transform_1, window_bounds = array<i64: 128, 200>}, {pipeline_mode = #tpu.pipeline_mode<synchronous>, transform_indices = @transform_2, window_bounds = array<i64: 1, 200>}, {pipeline_mode = #tpu.pipeline_mode<synchronous>, transform_indices = @transform_3, window_bounds = array<i64: 200, 128>}, {pipeline_mode = #tpu.pipeline_mode<synchronous>, transform_indices = @transform_4, window_bounds = array<i64: 1, 128>}, {pipeline_mode = #tpu.pipeline_mode<synchronous>, transform_indices = @transform_5, window_bounds = array<i64: 128, 200>}, {pipeline_mode = #tpu.pipeline_mode<synchronous>, transform_indices = @transform_6, window_bounds = array<i64: 1, 200>}, {pipeline_mode = #tpu.pipeline_mode<synchronous>, transform_indices = @transform_7, window_bounds = array<i64: 200, 128>}, {pipeline_mode = #tpu.pipeline_mode<synchronous>, transform_indices = @transform_8, window_bounds = array<i64: 1, 128>}, {transform_indices = @transform_9, window_bounds = array<i64: 8, 128>}, {transform_indices = @transform_10, window_bounds = array<i64: 8, 128>}]} {
    %c0 = arith.constant 0 : index
    %c0_0 = arith.constant 0 : index
    %0 = vector.load %arg1[%c0, %c0_0] : memref<8x128xf32, #tpu.memory_space<vmem>>, vector<8x128xf32>
    %c0_1 = arith.constant 0 : index
    %c0_2 = arith.constant 0 : index
    %1 = vector.load %arg2[%c0_1, %c0_2] : memref<128x200xf32, #tpu.memory_space<vmem>>, vector<128x200xf32>
    %cst = arith.constant dense<0.000000e+00> : vector<8x200xf32>
    %2 = tpu.matmul %0, %1, %cst {dimension_numbers = #tpu.dot_dimension_numbers<[1], [0], [0], [1], [0, 0, 1, 1], [], []>} : vector<8x128xf32>, vector<128x200xf32>, vector<8x200xf32> -> vector<8x200xf32>
    %c0_3 = arith.constant 0 : index
    %c0_4 = arith.constant 0 : index
    %3 = vector.load %arg3[%c0_3, %c0_4] : memref<1x200xf32, #tpu.memory_space<vmem>>, vector<1x200xf32>
    %4 = vector.broadcast %3 : vector<1x200xf32> to vector<8x200xf32>
    %5 = arith.addf %2, %4 : vector<8x200xf32>
    %cst_5 = arith.constant 0.000000e+00 : f32
    %6 = vector.broadcast %cst_5 : f32 to vector<8x200xf32>
    %7 = arith.maximumf %5, %6 : vector<8x200xf32>
    %c0_6 = arith.constant 0 : index
    %c0_7 = arith.constant 0 : index
    %8 = vector.load %arg4[%c0_6, %c0_7] : memref<200x128xf32, #tpu.memory_space<vmem>>, vector<200x128xf32>
    %cst_8 = arith.constant dense<0.000000e+00> : vector<8x128xf32>
    %9 = tpu.matmul %7, %8, %cst_8 {dimension_numbers = #tpu.dot_dimension_numbers<[1], [0], [0], [1], [0, 0, 1, 1], [], []>} : vector<8x200xf32>, vector<200x128xf32>, vector<8x128xf32> -> vector<8x128xf32>
    %c0_9 = arith.constant 0 : index
    %c0_10 = arith.constant 0 : index
    %10 = vector.load %arg5[%c0_9, %c0_10] : memref<1x128xf32, #tpu.memory_space<vmem>>, vector<1x128xf32>
    %11 = vector.broadcast %10 : vector<1x128xf32> to vector<8x128xf32>
    %12 = arith.addf %9, %11 : vector<8x128xf32>
    %c0_11 = arith.constant 0 : index
    %c0_12 = arith.constant 0 : index
    %13 = vector.load %arg6[%c0_11, %c0_12] : memref<128x200xf32, #tpu.memory_space<vmem>>, vector<128x200xf32>
    %cst_13 = arith.constant dense<0.000000e+00> : vector<8x200xf32>
    %14 = tpu.matmul %12, %13, %cst_13 {dimension_numbers = #tpu.dot_dimension_numbers<[1], [0], [0], [1], [0, 0, 1, 1], [], []>} : vector<8x128xf32>, vector<128x200xf32>, vector<8x200xf32> -> vector<8x200xf32>
    %c0_14 = arith.constant 0 : index
    %c0_15 = arith.constant 0 : index
    %15 = vector.load %arg7[%c0_14, %c0_15] : memref<1x200xf32, #tpu.memory_space<vmem>>, vector<1x200xf32>
    %16 = vector.broadcast %15 : vector<1x200xf32> to vector<8x200xf32>
    %17 = arith.addf %14, %16 : vector<8x200xf32>
    %cst_16 = arith.constant 0.000000e+00 : f32
    %18 = vector.broadcast %cst_16 : f32 to vector<8x200xf32>
    %19 = arith.maximumf %17, %18 : vector<8x200xf32>
    %c0_17 = arith.constant 0 : index
    %c0_18 = arith.constant 0 : index
    %20 = vector.load %arg8[%c0_17, %c0_18] : memref<200x128xf32, #tpu.memory_space<vmem>>, vector<200x128xf32>
    %cst_19 = arith.constant dense<0.000000e+00> : vector<8x128xf32>
    %21 = tpu.matmul %19, %20, %cst_19 {dimension_numbers = #tpu.dot_dimension_numbers<[1], [0], [0], [1], [0, 0, 1, 1], [], []>} : vector<8x200xf32>, vector<200x128xf32>, vector<8x128xf32> -> vector<8x128xf32>
    %c0_20 = arith.constant 0 : index
    %c0_21 = arith.constant 0 : index
    %22 = vector.load %arg9[%c0_20, %c0_21] : memref<1x128xf32, #tpu.memory_space<vmem>>, vector<1x128xf32>
    %23 = vector.broadcast %22 : vector<1x128xf32> to vector<8x128xf32>
    %24 = arith.addf %21, %23 : vector<8x128xf32>
    %cst_22 = arith.constant 0.000000e+00 : f32
    %25 = vector.broadcast %cst_22 : f32 to vector<8x128xf32>
    %26 = arith.maximumf %24, %25 : vector<8x128xf32>
    %c0_23 = arith.constant 0 : index
    %c0_24 = arith.constant 0 : index
    %27 = vector.load %arg10[%c0_23, %c0_24] : memref<8x128xf32, #tpu.memory_space<vmem>>, vector<8x128xf32>
    tpu.vector_store %arg10[%c0_23, %c0_24], %12 {strides = array<i32>} : memref<8x128xf32, #tpu.memory_space<vmem>>, vector<8x128xf32>,
    %c0_25 = arith.constant 0 : index
    %c0_26 = arith.constant 0 : index
    %28 = vector.load %arg11[%c0_25, %c0_26] : memref<8x128xf32, #tpu.memory_space<vmem>>, vector<8x128xf32>
    tpu.vector_store %arg11[%c0_25, %c0_26], %26 {strides = array<i32>} : memref<8x128xf32, #tpu.memory_space<vmem>>, vector<8x128xf32>,
    return
  }
  func.func @transform_0(%arg0: i32) -> (i32, i32) {
    %c0_i32 = arith.constant 0 : i32
    %c0_i32_0 = arith.constant 0 : i32
    return %arg0, %c0_i32 : i32, i32
  }
  func.func @transform_1(%arg0: i32) -> (i32, i32) {
    %c0_i32 = arith.constant 0 : i32
    %c0_i32_0 = arith.constant 0 : i32
    %c0_i32_1 = arith.constant 0 : i32
    return %c0_i32, %c0_i32_0 : i32, i32
  }
  func.func @transform_2(%arg0: i32) -> (i32, i32) {
    %c0_i32 = arith.constant 0 : i32
    %c0_i32_0 = arith.constant 0 : i32
    %c0_i32_1 = arith.constant 0 : i32
    return %c0_i32, %c0_i32_0 : i32, i32
  }
  func.func @transform_3(%arg0: i32) -> (i32, i32) {
    %c0_i32 = arith.constant 0 : i32
    %c0_i32_0 = arith.constant 0 : i32
    %c0_i32_1 = arith.constant 0 : i32
    return %c0_i32, %c0_i32_0 : i32, i32
  }
  func.func @transform_4(%arg0: i32) -> (i32, i32) {
    %c0_i32 = arith.constant 0 : i32
    %c0_i32_0 = arith.constant 0 : i32
    %c0_i32_1 = arith.constant 0 : i32
    return %c0_i32, %c0_i32_0 : i32, i32
  }
  func.func @transform_5(%arg0: i32) -> (i32, i32) {
    %c0_i32 = arith.constant 0 : i32
    %c0_i32_0 = arith.constant 0 : i32
    %c0_i32_1 = arith.constant 0 : i32
    return %c0_i32, %c0_i32_0 : i32, i32
  }
  func.func @transform_6(%arg0: i32) -> (i32, i32) {
    %c0_i32 = arith.constant 0 : i32
    %c0_i32_0 = arith.constant 0 : i32
    %c0_i32_1 = arith.constant 0 : i32
    return %c0_i32, %c0_i32_0 : i32, i32
  }
  func.func @transform_7(%arg0: i32) -> (i32, i32) {
    %c0_i32 = arith.constant 0 : i32
    %c0_i32_0 = arith.constant 0 : i32
    %c0_i32_1 = arith.constant 0 : i32
    return %c0_i32, %c0_i32_0 : i32, i32
  }
  func.func @transform_8(%arg0: i32) -> (i32, i32) {
    %c0_i32 = arith.constant 0 : i32
    %c0_i32_0 = arith.constant 0 : i32
    %c0_i32_1 = arith.constant 0 : i32
    return %c0_i32, %c0_i32_0 : i32, i32
  }
  func.func @transform_9(%arg0: i32) -> (i32, i32) {
    %c0_i32 = arith.constant 0 : i32
    %c0_i32_0 = arith.constant 0 : i32
    return %arg0, %c0_i32 : i32, i32
  }
  func.func @transform_10(%arg0: i32) -> (i32, i32) {
    %c0_i32 = arith.constant 0 : i32
    %c0_i32_0 = arith.constant 0 : i32
    return %arg0, %c0_i32 : i32, i32
  }
}

</mosaic_0001>

<bundles_post_ra>
// kernel: tpu_custom_call.1
= control target key start
LH: loop header
LB: loop body
LE: loop exit
PB: predicated region body
PF: predicated region fallthrough
CT: control target
= control target key end

     0   :  { %16 = vsyncpa [#allocation3], 0  ;;  %v705_v7 = vmov 0.0   ;;  %v706_v8 = vmov 0.0|0.0   ;;  %s1187_s0 = inlined_call_operand.vmem [shape: f32[8,128], index: 0, kind: input, shape index: {}]   ;;  %s1188_s1 = inlined_call_operand.vmem [shape: f32[128,200], index: 1, kind: input, shape index: {}]   ;;  %s1189_s2 = inlined_call_operand.vmem [shape: f32[1,200], index: 2, kind: input, shape index: {}]   ;;  %s1190_s3 = inlined_call_operand.vmem [shape: f32[200,128], index: 3, kind: input, shape index: {}]   ;;  %s1191_s4 = inlined_call_operand.vmem [shape: f32[1,128], index: 4, kind: input, shape index: {}]   ;;  %s1192_s5 = inlined_call_operand.vmem [shape: f32[128,200], index: 5, kind: input, shape index: {}]   ;;  %s1193_s6 = inlined_call_operand.vmem [shape: f32[1,200], index: 6, kind: input, shape index: {}]   ;;  %s1194_s7 = inlined_call_operand.vmem [shape: f32[200,128], index: 7, kind: input, shape index: {}]   ;;  %s1195_s8 = inlined_call_operand.vmem [shape: f32[1,128], index: 8, kind: input, shape index: {}]   ;;  %s1196_s9 = inlined_call_operand.hbm [shape: f32[8,128], index: 9, kind: output, shape index: {0}]   ;;  %s1197_s10 = inlined_call_operand.hbm [shape: f32[8,128], index: 10, kind: output, shape index: {1}]  }
   0x1   :  { %v38_v0 = vld [vmem:[%s1188_s1 + $0x8] sm:$0xff]  ;;  %v40_v1 = vld [vmem:[%s1188_s1 + $0x18] sm:$0xff]  ;;  %v37_v2 = vld [vmem:[%s1188_s1] sm:$0xff]  ;;  %145 = vmatprep.mubr.f32.mxu0 %v705_v7  ;;  %549 = vmatprep.subr.bf16.mxu1 %v706_v8 }
   0x2   :  { %v517_v3 = vpack.c.bf16 %v40_v1, %v38_v0  ;;  %v39_v4 = vld [vmem:[%s1188_s1 + $0x10] sm:$0xff]  ;;  %v42_v5 = vld [vmem:[%s1188_s1 + $0x28] sm:$0xff]  ;;  %v44_v6 = vld [vmem:[%s1188_s1 + $0x38] sm:$0xff] }
   0x3   :  { %v519_v9 = vpack.c.bf16 %v39_v4, %v37_v2  ;;  %v521_v10 = vpack.c.bf16 %v44_v6, %v42_v5  ;;  %v41_v11 = vld [vmem:[%s1188_s1 + $0x20] sm:$0xff]  ;;  %v43_v12 = vld [vmem:[%s1188_s1 + $0x30] sm:$0xff]  ;;  %v46_v13 = vld [vmem:[%s1188_s1 + $0x48] sm:$0xff] }
   0x4   :  { %518 = vmatprep.subr.bf16.mxu0 %v517_v3  ;;  %v48_v14 = vld [vmem:[%s1188_s1 + $0x58] sm:$0xff]  ;;  %v523_v15 = vpack.c.bf16 %v43_v12, %v41_v11  ;;  %v45_v17 = vld [vmem:[%s1188_s1 + $0x40] sm:$0xff]  ;;  %v47_v18 = vld [vmem:[%s1188_s1 + $0x50] sm:$0xff] }
   0x5   :  { %520 = vmatpush1.bf16.msra.mxu0 %v519_v9  ;;  %v525_v16 = vpack.c.bf16 %v48_v14, %v46_v13  ;;  %v50_v19 = vld [vmem:[%s1188_s1 + $0x68] sm:$0xff]  ;;  %v52_v20 = vld [vmem:[%s1188_s1 + $0x78] sm:$0xff]  ;;  %v527_v21 = vpack.c.bf16 %v47_v18, %v45_v17  ;;  %v49_v23 = vld [vmem:[%s1188_s1 + $0x60] sm:$0xff] }
   0x6   :  { %522 = vmatprep.subr.bf16.mxu0 %v521_v10  ;;  %v529_v22 = vpack.c.bf16 %v52_v20, %v50_v19  ;;  %v51_v24 = vld [vmem:[%s1188_s1 + $0x70] sm:$0xff]  ;;  %v54_v25 = vld [vmem:[%s1188_s1 + $0x88] sm:$0xff]  ;;  %v56_v26 = vld [vmem:[%s1188_s1 + $0x98] sm:$0xff] }
   0x7   :  { %v154_v27 = vld [vmem:[%s1190_s3] sm:$0xff]  ;;  %v155_v28 = vld [vmem:[%s1190_s3 + $0x8] sm:$0xff]  ;;  %v156_v29 = vld [vmem:[%s1190_s3 + $0x10] sm:$0xff]  ;;  %v531_v30 = vpack.c.bf16 %v51_v24, %v49_v23  ;;  %v533_v33 = vpack.c.bf16 %v56_v26, %v54_v25 }
   0x8   :  { %v550_v31 = vpack.c.bf16 %v155_v28, %v154_v27  ;;  %v157_v32 = vld [vmem:[%s1190_s3 + $0x18] sm:$0xff]  ;;  %v53_v34 = vld [vmem:[%s1188_s1 + $0x80] sm:$0xff]  ;;  %v55_v35 = vld [vmem:[%s1188_s1 + $0x90] sm:$0xff] }
   0x9   :  { %524 = vmatpush1.bf16.msra.mxu0 %v523_v15  ;;  %v58_v36 = vld [vmem:[%s1188_s1 + $0xa8] sm:$0xff]  ;;  %v60_v37 = vld [vmem:[%s1188_s1 + $0xb8] sm:$0xff]  ;;  %v553_v38 = vpack.c.bf16 %v157_v32, %v156_v29  ;;  %v158_v39 = vld [vmem:[%s1190_s3 + $0x20] sm:$0xff]  ;;  %v535_v41 = vpack.c.bf16 %v55_v35, %v53_v34 }
   0xa   :  { %526 = vmatprep.subr.bf16.mxu0 %v525_v16  ;;  %551 = vmatpush1.bf16.msra.mxu1 %v550_v31  ;;  %v159_v40 = vld [vmem:[%s1190_s3 + $0x28] sm:$0xff]  ;;  %v537_v42 = vpack.c.bf16 %v60_v37, %v58_v36  ;;  %v57_v43 = vld [vmem:[%s1188_s1 + $0xa0] sm:$0xff]  ;;  %v59_v44 = vld [vmem:[%s1188_s1 + $0xb0] sm:$0xff] }
   0xb   :  { %552 = vmatprep.subr.bf16.mxu1 %v706_v8  ;;  %v62_v45 = vld [vmem:[%s1188_s1 + $0xc8] sm:$0xff]  ;;  %v64_v46 = vld [vmem:[%s1188_s1 + $0xd8] sm:$0xff]  ;;  %v556_v47 = vpack.c.bf16 %v159_v40, %v158_v39 }
   0xd   :  { %528 = vmatpush1.bf16.msra.mxu0 %v527_v21 }
   0xe   :  { %530 = vmatprep.subr.bf16.mxu0 %v529_v22  ;;  %554 = vmatpush1.bf16.msra.mxu1 %v553_v38 }
  0x11   :  { %532 = vmatpush1.bf16.msra.mxu0 %v531_v30 }
  0x12   :  { %534 = vmatprep.subr.bf16.mxu0 %v533_v33 }
  0x13   :  { %17 = vsyncpa [#allocation5], 0  ;;  %555 = vmatprep.subr.bf16.mxu1 %v706_v8  ;;  %v160_v48 = vld [vmem:[%s1190_s3 + $0x30] sm:$0xff]  ;;  %v161_v49 = vld [vmem:[%s1190_s3 + $0x38] sm:$0xff]  ;;  %v539_v50 = vpack.c.bf16 %v59_v44, %v57_v43  ;;  %v541_v51 = vpack.c.bf16 %v64_v46, %v62_v45  ;;  %vm186_vm0 = vcmask 588800  }
  0x14   :  { %v61_v52 = vld [vmem:[%s1188_s1 + $0xc0] sm:$0xff]  ;;  %v63_v53 = vld [vmem:[%s1188_s1 + $0xd0] sm:$0xff]  ;;  %v66_v54 = vld [vmem:[%s1188_s1 + $0xe8] sm:$0xff]  ;;  %557 = vmatpush1.bf16.msra.mxu1 %v556_v47  ;;  %v559_v56 = vpack.c.bf16 %v161_v49, %v160_v48 }
  0x15   :  { %536 = vmatpush1.bf16.msra.mxu0 %v535_v41  ;;  %v68_v55 = vld [vmem:[%s1188_s1 + $0xf8] sm:$0xff]  ;;  %558 = vmatprep.subr.bf16.mxu1 %v706_v8  ;;  %v162_v57 = vld [vmem:[%s1190_s3 + $0x40] sm:$0xff]  ;;  %v163_v58 = vld [vmem:[%s1190_s3 + $0x48] sm:$0xff]  ;;  %v543_v59 = vpack.c.bf16 %v63_v53, %v61_v52 }
  0x16   :  { %538 = vmatprep.subr.bf16.mxu0 %v537_v42  ;;  %v545_v60 = vpack.c.bf16 %v68_v55, %v66_v54  ;;  %v65_v61 = vld [vmem:[%s1188_s1 + $0xe0] sm:$0xff]  ;;  %v67_v62 = vld [vmem:[%s1188_s1 + $0xf0] sm:$0xff]  ;;  %v562_v63 = vpack.c.bf16 %v163_v58, %v162_v57  ;;  %v165_v1 = vld [vmem:[%s1190_s3 + $0x58] sm:$0xff] }
  0x17   :  { %v164_v0 = vld [vmem:[%s1190_s3 + $0x50] sm:$0xff]  ;;  %v547_v2 = vpack.c.bf16 %v67_v62, %v65_v61  ;;  %v166_v4 = vld [vmem:[%s1190_s3 + $0x60] sm:$0xff]  ;;  %v167_v5 = vld [vmem:[%s1190_s3 + $0x68] sm:$0xff] }
  0x18   :  { %560 = vmatpush1.bf16.msra.mxu1 %v559_v56  ;;  %v565_v3 = vpack.c.bf16 %v165_v1, %v164_v0  ;;  %v36_v6 = vld [vmem:[%s1187_s0] sm:$0xff]  ;;  %v568_v9 = vpack.c.bf16 %v167_v5, %v166_v4  ;;  %v168_v10 = vld [vmem:[%s1190_s3 + $0x70] sm:$0xff]  ;;  %v169_v11 = vld [vmem:[%s1190_s3 + $0x78] sm:$0xff] }
  0x19   :  { %540 = vmatpush1.bf16.msra.mxu0 %v539_v50  ;;  %561 = vmatprep.subr.bf16.mxu1 %v706_v8  ;;  %v571_v12 = vpack.c.bf16 %v169_v11, %v168_v10  ;;  %v170_v13 = vld [vmem:[%s1190_s3 + $0x80] sm:$0xff]  ;;  %v171_v14 = vld [vmem:[%s1190_s3 + $0x88] sm:$0xff]  ;;  %v172_v16 = vld [vmem:[%s1190_s3 + $0x90] sm:$0xff] }
  0x1a   :  { %542 = vmatprep.subr.bf16.mxu0 %v541_v51  ;;  %v574_v15 = vpack.c.bf16 %v171_v14, %v170_v13  ;;  %v173_v17 = vld [vmem:[%s1190_s3 + $0x98] sm:$0xff]  ;;  %v174_v19 = vld [vmem:[%s1190_s3 + $0xa0] sm:$0xff]  ;;  %v175_v20 = vld [vmem:[%s1190_s3 + $0xa8] sm:$0xff] }
  0x1b   :  { %v577_v18 = vpack.c.bf16 %v173_v17, %v172_v16  ;;  %v580_v21 = vpack.c.bf16 %v175_v20, %v174_v19  ;;  %v176_v22 = vld [vmem:[%s1190_s3 + $0xb0] sm:$0xff]  ;;  %v177_v23 = vld [vmem:[%s1190_s3 + $0xb8] sm:$0xff]  ;;  %v178_v25 = vld [vmem:[%s1190_s3 + $0xc0] sm:$0xff] }
  0x1c   :  { %563 = vmatpush1.bf16.msra.mxu1 %v562_v63  ;;  %v583_v24 = vpack.c.bf16 %v177_v23, %v176_v22  ;;  %v261_v26 = vld [vmem:[%s1192_s5 + $0x8] sm:$0xff]  ;;  %v263_v27 = vld [vmem:[%s1192_s5 + $0x18] sm:$0xff]  ;;  %v260_v28 = vld [vmem:[%s1192_s5] sm:$0xff] }
  0x1d   :  { %544 = vmatpush1.bf16.msra.mxu0 %v543_v59  ;;  %564 = vmatprep.subr.bf16.mxu1 %v706_v8  ;;  %v585_v29 = vpack.c.bf16 %v263_v27, %v261_v26  ;;  %v262_v30 = vld [vmem:[%s1192_s5 + $0x10] sm:$0xff]  ;;  %v265_v31 = vld [vmem:[%s1192_s5 + $0x28] sm:$0xff]  ;;  %v267_v32 = vld [vmem:[%s1192_s5 + $0x38] sm:$0xff] }
  0x1e   :  { %546 = vmatprep.subr.bf16.mxu0 %v545_v60  ;;  %v587_v33 = vpack.c.bf16 %v262_v30, %v260_v28  ;;  %v589_v34 = vpack.c.bf16 %v267_v32, %v265_v31  ;;  %v264_v35 = vld [vmem:[%s1192_s5 + $0x20] sm:$0xff]  ;;  %v266_v36 = vld [vmem:[%s1192_s5 + $0x30] sm:$0xff]  ;;  %v269_v37 = vld [vmem:[%s1192_s5 + $0x48] sm:$0xff] }
  0x1f   :  { %v271_v38 = vld [vmem:[%s1192_s5 + $0x58] sm:$0xff]  ;;  %v591_v39 = vpack.c.bf16 %v266_v36, %v264_v35  ;;  %v268_v41 = vld [vmem:[%s1192_s5 + $0x40] sm:$0xff]  ;;  %v270_v42 = vld [vmem:[%s1192_s5 + $0x50] sm:$0xff] }
  0x20   :  { %566 = vmatpush1.bf16.msra.mxu1 %v565_v3  ;;  %v593_v40 = vpack.c.bf16 %v271_v38, %v269_v37  ;;  %v273_v43 = vld [vmem:[%s1192_s5 + $0x68] sm:$0xff]  ;;  %v275_v44 = vld [vmem:[%s1192_s5 + $0x78] sm:$0xff]  ;;  %v595_v45 = vpack.c.bf16 %v270_v42, %v268_v41  ;;  %v272_v47 = vld [vmem:[%s1192_s5 + $0x60] sm:$0xff] }
  0x21   :  { %548 = vmatpush1.bf16.msra.mxu0 %v547_v2  ;;  %567 = vmatprep.subr.bf16.mxu1 %v706_v8  ;;  %v597_v46 = vpack.c.bf16 %v275_v44, %v273_v43  ;;  %v274_v48 = vld [vmem:[%s1192_s5 + $0x70] sm:$0xff]  ;;  %v277_v49 = vld [vmem:[%s1192_s5 + $0x88] sm:$0xff]  ;;  %v279_v50 = vld [vmem:[%s1192_s5 + $0x98] sm:$0xff] }
  0x22   :  { %586 = vmatprep.subr.bf16.mxu0 %v585_v29  ;;  %v599_v51 = vpack.c.bf16 %v274_v48, %v272_v47  ;;  %v601_v52 = vpack.c.bf16 %v279_v50, %v277_v49  ;;  %v276_v53 = vld [vmem:[%s1192_s5 + $0x80] sm:$0xff]  ;;  %v278_v54 = vld [vmem:[%s1192_s5 + $0x90] sm:$0xff]  ;;  %v281_v55 = vld [vmem:[%s1192_s5 + $0xa8] sm:$0xff] }
  0x23   :  { %v283_v56 = vld [vmem:[%s1192_s5 + $0xb8] sm:$0xff]  ;;  %v603_v57 = vpack.c.bf16 %v278_v54, %v276_v53  ;;  %v280_v59 = vld [vmem:[%s1192_s5 + $0xa0] sm:$0xff]  ;;  %v282_v60 = vld [vmem:[%s1192_s5 + $0xb0] sm:$0xff] }
  0x24   :  { %146 = vmatmul.mubr.f32.vlgmr.msra.gmra.mrb[0].mxu0 %v36_v6  ;;  %569 = vmatpush1.bf16.msra.mxu1 %v568_v9  ;;  %v605_v58 = vpack.c.bf16 %v283_v56, %v281_v55  ;;  %v285_v61 = vld [vmem:[%s1192_s5 + $0xc8] sm:$0xff]  ;;  %v287_v62 = vld [vmem:[%s1192_s5 + $0xd8] sm:$0xff]  ;;  %v607_v63 = vpack.c.bf16 %v282_v60, %v280_v59  ;;  %v284_v1 = vld [vmem:[%s1192_s5 + $0xc0] sm:$0xff]  ;;  %v71_v9 = vlaneseq }
  0x25   :  { %368 = vmatprep.mubr.f32.mxu0 %v705_v7  ;;  %570 = vmatprep.subr.bf16.mxu1 %v706_v8  ;;  %v609_v0 = vpack.c.bf16 %v287_v62, %v285_v61  ;;  %v286_v2 = vld [vmem:[%s1192_s5 + $0xd0] sm:$0xff]  ;;  %v289_v3 = vld [vmem:[%s1192_s5 + $0xe8] sm:$0xff]  ;;  %v291_v4 = vld [vmem:[%s1192_s5 + $0xf8] sm:$0xff] }
  0x26   :  { %588 = vmatpush1.bf16.msra.mxu0 %v587_v33  ;;  %v611_v5 = vpack.c.bf16 %v286_v2, %v284_v1  ;;  %v613_v6 = vpack.c.bf16 %v291_v4, %v289_v3  ;;  %v1044_v10 = vshrl.u32 %v71_v9, 7  ;;  %v288_v22 = vld [vmem:[%s1192_s5 + $0xe0] sm:$0xff]  ;;  %v290_v23 = vld [vmem:[%s1192_s5 + $0xf0] sm:$0xff]  ;;  %v378_v26 = vld [vmem:[%s1194_s7 + $0x8] sm:$0xff] }
  0x27   :  { %590 = vmatprep.subr.bf16.mxu0 %v589_v34  ;;  %v379_v27 = vld [vmem:[%s1194_s7 + $0x10] sm:$0xff]  ;;  %v380_v29 = vld [vmem:[%s1194_s7 + $0x18] sm:$0xff]  ;;  %v381_v31 = vld [vmem:[%s1194_s7 + $0x20] sm:$0xff] }
  0x28   :  { %572 = vmatpush1.bf16.msra.mxu1 %v571_v12  ;;  %v73_v11 = vsub.s32 0, %v1044_v10  ;;  %v69_v12 = vld [vmem:[%s1189_s2] sm:$0x3]  ;;  %v77_v13 = vsub.s32 1, %v1044_v10  ;;  %v621_v30 = vpack.c.bf16 %v380_v29, %v379_v27  ;;  %v382_v32 = vld [vmem:[%s1194_s7 + $0x28] sm:$0xff]  ;;  %v383_v34 = vld [vmem:[%s1194_s7 + $0x30] sm:$0xff] }
  0x29   :  { %573 = vmatprep.subr.bf16.mxu1 %v706_v8  ;;  %v624_v33 = vpack.c.bf16 %v382_v32, %v381_v31  ;;  %v384_v35 = vld [vmem:[%s1194_s7 + $0x38] sm:$0xff]  ;;  %v385_v37 = vld [vmem:[%s1194_s7 + $0x40] sm:$0xff]  ;;  %v386_v38 = vld [vmem:[%s1194_s7 + $0x48] sm:$0xff] }
  0x2a   :  { %592 = vmatpush1.bf16.msra.mxu0 %v591_v39  ;;  %v74_v14 = vrot.slane %v69_v12, %v73_v11  ;;  %v627_v36 = vpack.c.bf16 %v384_v35, %v383_v34  ;;  %v630_v39 = vpack.c.bf16 %v386_v38, %v385_v37  ;;  %v388_v41 = vld [vmem:[%s1194_s7 + $0x58] sm:$0xff]  ;;  %v389_v43 = vld [vmem:[%s1194_s7 + $0x60] sm:$0xff]  ;;  %v390_v44 = vld [vmem:[%s1194_s7 + $0x68] sm:$0xff] }
  0x2b   :  { %594 = vmatprep.subr.bf16.mxu0 %v593_v40  ;;  %v387_v40 = vld [vmem:[%s1194_s7 + $0x50] sm:$0xff]  ;;  %v392_v47 = vld [vmem:[%s1194_s7 + $0x78] sm:$0xff]  ;;  %v393_v49 = vld [vmem:[%s1194_s7 + $0x80] sm:$0xff] }
  0x2c   :  { %575 = vmatpush1.bf16.msra.mxu1 %v574_v15  ;;  %v78_v15 = vrot.slane %v69_v12, %v77_v13  ;;  %v633_v42 = vpack.c.bf16 %v388_v41, %v387_v40  ;;  %v394_v50 = vld [vmem:[%s1194_s7 + $0x88] sm:$0xff]  ;;  %v396_v53 = vld [vmem:[%s1194_s7 + $0x98] sm:$0xff]  ;;  %v397_v55 = vld [vmem:[%s1194_s7 + $0xa0] sm:$0xff] }
  0x2d   :  { %576 = vmatprep.subr.bf16.mxu1 %v706_v8  ;;  %v398_v56 = vld [vmem:[%s1194_s7 + $0xa8] sm:$0xff]  ;;  %v399_v62 = vld [vmem:[%s1194_s7 + $0xb0] sm:$0xff]  ;;  %v292_v1 = vld [vmem:[%s1193_s6] sm:$0x3] }
  0x2e   :  { %596 = vmatpush1.bf16.msra.mxu0 %v595_v45  ;;  %v636_v45 = vpack.c.bf16 %v390_v44, %v389_v43  ;;  %v297_v2 = vrot.slane %v292_v1, %v73_v11  ;;  %v301_v3 = vrot.slane %v292_v1, %v77_v13 }
  0x2f   :  { %598 = vmatprep.subr.bf16.mxu0 %v597_v46  ;;  %v391_v46 = vld [vmem:[%s1194_s7 + $0x70] sm:$0xff] }
  0x30   :  { %578 = vmatpush1.bf16.msra.mxu1 %v577_v18  ;;  %v639_v48 = vpack.c.bf16 %v392_v47, %v391_v46 }
  0x31   :  { %579 = vmatprep.subr.bf16.mxu1 %v706_v8 }
  0x32   :  { %600 = vmatpush1.bf16.msra.mxu0 %v599_v51  ;;  %v642_v51 = vpack.c.bf16 %v394_v50, %v393_v49 }
  0x33   :  { %602 = vmatprep.subr.bf16.mxu0 %v601_v52  ;;  %v395_v52 = vld [vmem:[%s1194_s7 + $0x90] sm:$0xff] }
  0x34   :  { %581 = vmatpush1.bf16.msra.mxu1 %v580_v21  ;;  %v645_v54 = vpack.c.bf16 %v396_v53, %v395_v52 }
  0x35   :  { %582 = vmatprep.subr.bf16.mxu1 %v706_v8 }
  0x36   :  { %604 = vmatpush1.bf16.msra.mxu0 %v603_v57  ;;  %v648_v57 = vpack.c.bf16 %v398_v56, %v397_v55 }
  0x37   :  { %606 = vmatprep.subr.bf16.mxu0 %v605_v58  ;;  %v513_v58 = vld [vmem:[%s1191_s4] ss:$0 sm:$0xff] }
  0x38   :  { %584 = vmatpush1.bf16.msra.mxu1 %v583_v24  ;;  %v615_v24 = vpack.c.bf16 %v290_v23, %v288_v22 }
  0x39   :  { %238 = vmatprep.subr.mxu1 %v705_v7 }
  0x3a   :  { %608 = vmatpush1.bf16.msra.mxu0 %v607_v63  ;;  %v400_v63 = vld [vmem:[%s1194_s7 + $0xb8] sm:$0xff] }
  0x3b   :  { %610 = vmatprep.subr.bf16.mxu0 %v609_v0  ;;  %v651_v0 = vpack.c.bf16 %v400_v63, %v399_v62 }
  0x3c   :  { %239 = vmatpush1.msra.mxu1 %v178_v25  ;;  %v377_v25 = vld [vmem:[%s1194_s7] sm:$0xff] }
  0x3d   :  { %617 = vmatprep.subr.bf16.mxu1 %v706_v8  ;;  %v618_v28 = vpack.c.bf16 %v378_v26, %v377_v25 }
  0x3e   :  { %612 = vmatpush1.bf16.msra.mxu0 %v611_v5 }
  0x3f   :  { %614 = vmatprep.subr.bf16.mxu0 %v613_v6 }
  0x42   :  { %616 = vmatpush1.bf16.msra.mxu0 %v615_v24 }
  0xf7   :  { %v147_v16 = vpop.f32.mrb[0].mxu0 }
  0xf8   :  { %v148_v17 = vadd.f32 %v147_v16, %v74_v14  ;;  %v149_v18 = vpop.f32.mrb[1].mxu0 }
  0xf9   :  { %v150_v19 = vadd.f32 %v149_v18, %v78_v15 }
  0xfa   :  { %v152_v21 = vmax.f32 %v148_v17, 0.0 }
  0xfb   :  { %v153_v20 = vmax.f32 %v150_v19, 0.0 }
  0xfd   :  { %514 = vmatprep.mubr.msk.f32.mxu1 %vm186_vm0, %v153_v20 }
  0xfe   :  { %255 = vmatmul.mubr.f32.vlgmr.msra.gmra.mrb[0].mxu1 %v152_v21 }
  0xff   :  { %619 = vmatpush1.bf16.msra.mxu1 %v618_v28 }
 0x100   :  { %620 = vmatprep.subr.bf16.mxu1 %v706_v8 }
 0x103   :  { %622 = vmatpush1.bf16.msra.mxu1 %v621_v30 }
 0x104   :  { %623 = vmatprep.subr.bf16.mxu1 %v706_v8 }
 0x107   :  { %625 = vmatpush1.bf16.msra.mxu1 %v624_v33 }
 0x108   :  { %626 = vmatprep.subr.bf16.mxu1 %v706_v8 }
 0x10b   :  { %628 = vmatpush1.bf16.msra.mxu1 %v627_v36 }
 0x10c   :  { %629 = vmatprep.subr.bf16.mxu1 %v706_v8 }
 0x10f   :  { %631 = vmatpush1.bf16.msra.mxu1 %v630_v39 }
 0x110   :  { %632 = vmatprep.subr.bf16.mxu1 %v706_v8 }
 0x113   :  { %634 = vmatpush1.bf16.msra.mxu1 %v633_v42 }
 0x114   :  { %635 = vmatprep.subr.bf16.mxu1 %v706_v8 }
 0x117   :  { %637 = vmatpush1.bf16.msra.mxu1 %v636_v45 }
 0x118   :  { %638 = vmatprep.subr.bf16.mxu1 %v706_v8 }
 0x11b   :  { %640 = vmatpush1.bf16.msra.mxu1 %v639_v48 }
 0x11c   :  { %641 = vmatprep.subr.bf16.mxu1 %v706_v8 }
 0x11f   :  { %643 = vmatpush1.bf16.msra.mxu1 %v642_v51 }
 0x120   :  { %644 = vmatprep.subr.bf16.mxu1 %v706_v8 }
 0x123   :  { %646 = vmatpush1.bf16.msra.mxu1 %v645_v54 }
 0x124   :  { %647 = vmatprep.subr.bf16.mxu1 %v706_v8 }
 0x127   :  { %649 = vmatpush1.bf16.msra.mxu1 %v648_v57 }
 0x128   :  { %650 = vmatprep.subr.bf16.mxu1 %v706_v8  ;;  %v401_v8 = vld [vmem:[%s1194_s7 + $0xc0] sm:$0xff]  ;;  %s707_s7 = smov [#allocation2]  }
 0x129   :  { %s491_s25 = sshll.u32 %s707_s7, 4  ;;  %s492_s25 = int_to_ptr.vmem [resolvable:$true] %s491_s25 }
 0x12a   :  { %s657_s26 = scalar_lea.vmem %s492_s25, 128  ;;  %p662_p1 = scmp.lt.s32.totalorder %s492_s25, %s492_s25 }
 0x12b   :  { %652 = vmatpush1.bf16.msra.mxu1 %v651_v0  ;;  %p658_p0 = scmp.ne.s32.totalorder %s492_s25, %s657_s26  ;;  %p663_p2 = scmp.lt.s32.totalorder %s657_s26, %s657_s26 }
 0x12c   :  { %460 = vmatprep.subr.mxu1 %v705_v7 }
 0x12d   :  { %p664_p3 = por %p663_p2, %p662_p1 }
 0x12f   :  { %461 = vmatpush1.msra.mxu1 %v401_v8  ;;  %p665_p4 = pnand %p664_p3, %p658_p0 }
 0x1d1   :  { %v256_v59 = vpop.f32.mrb[0].mxu1 }
 0x1d2   :  { %v257_v60 = vadd.f32 %v513_v58, %v256_v59  ;;  %v258_v61 = vpop.f32.mrb[1].mxu1 }
 0x1d4   :  { %483 = vst [vmem:[#allocation2] sm:$0xff] %v257_v60  ;;  %369 = vmatmul.mubr.f32.vlgmr.msra.gmra.mrb[2].mxu0 %v257_v60 }
 0x2a7   :  { %v370_v4 = vpop.f32.mrb[2].mxu0 }
 0x2a8   :  { %v371_v5 = vadd.f32 %v370_v4, %v297_v2  ;;  %v372_v6 = vpop.f32.mrb[3].mxu0 }
 0x2a9   :  { %v373_v9 = vadd.f32 %v372_v6, %v301_v3 }
 0x2aa   :  { %v375_v12 = vmax.f32 %v371_v5, 0.0 }
 0x2ab   :  { %v376_v7 = vmax.f32 %v373_v9, 0.0 }
 0x2ad   :  { %516 = vmatprep.mubr.msk.f32.mxu1 %vm186_vm0, %v376_v7 }
 0x2ae   :  { %477 = vmatmul.mubr.f32.vlgmr.msra.gmra.mrb[2].mxu1 %v375_v12 }
 0x2af   :  { %668 = shalt.err (!%p665_p4)
}
 0x2b0   :  { %s669_s28 = scalar_lea.hbm %s1196_s9, 128 }
 0x2b1   :  { %p670_p5 = scmp.ne.s32.totalorder %s1196_s9, %s669_s28  ;;  %p673_p6 = scmp.lt.u32.totalorder %s669_s28, %s1196_s9 }
 0x2b3   :  { %p675_p7 = pnand %p673_p6, %p670_p5 }
 0x2b5   :  { %678 = shalt.err (!%p675_p7)
}
 0x2b6   :  { %494 = dma.vmem_to_hbm [thread:$0]  %s492_s25, 128, %s1196_s9, [#allocation3]   ;;  %v515_v10 = vld [vmem:[%s1195_s8] ss:$0 sm:$0xff] }
 0x2b7   :  { %s708_s14 = smov [#allocation4]  }
 0x2b8   :  { %s501_s15 = sshll.u32 %s708_s14, 4  ;;  %s502_s15 = int_to_ptr.vmem [resolvable:$true] %s501_s15 }
 0x2b9   :  { %s679_s16 = scalar_lea.vmem %s502_s15, 128  ;;  %p684_p9 = scmp.lt.s32.totalorder %s502_s15, %s502_s15 }
 0x2ba   :  { %p680_p8 = scmp.ne.s32.totalorder %s502_s15, %s679_s16  ;;  %p685_p10 = scmp.lt.s32.totalorder %s679_s16, %s679_s16 }
 0x2bc   :  { %p686_p11 = por %p685_p10, %p684_p9 }
 0x2be   :  { %p687_p12 = pnand %p686_p11, %p680_p8 }
 0x381   :  { %v478_v11 = vpop.f32.mrb[2].mxu1 }
 0x382   :  { %v479_v13 = vadd.f32 %v515_v10, %v478_v11  ;;  %v480_v14 = vpop.f32.mrb[3].mxu1 }
 0x384   :  { %v482_v15 = vmax.f32 %v479_v13, 0.0 }
 0x386   :  { %484 = vst [vmem:[#allocation4] sm:$0xff] %v482_v15 }
 0x387   :  { %690 = shalt.err (!%p687_p12)
}
 0x388   :  { %s691_s18 = scalar_lea.hbm %s1197_s10, 128 }
 0x389   :  { %p692_p13 = scmp.ne.s32.totalorder %s1197_s10, %s691_s18  ;;  %p695_p0 = scmp.lt.u32.totalorder %s691_s18, %s1197_s10 }
 0x38b   :  { %p697_p1 = pnand %p695_p0, %p692_p13 }
 0x38d   :  { %700 = shalt.err (!%p697_p1)
}
 0x38e   :  { %504 = dma.vmem_to_hbm [thread:$0]  %s502_s15, 128, %s1197_s10, [#allocation5]  }
 0x38f   :  { %701 = dma.done.wait [#allocation3], 128  }
 0x390   :  { %702 = vsyncadd [#allocation3], 4294967168 }
 0x391   :  { %703 = dma.done.wait [#allocation5], 128  }
 0x392   :  { %704 = vsyncadd [#allocation5], 4294967168 }
 0x393   :  { %511 = vsyncpa [#allocation3], 1 }
 0x394   :  { %512 = vsyncpa [#allocation5], 1 }

</bundles_post_ra>
